<compile_context>
chip_gen: v6e
topology: v6e:2x2x1
jax: 0.10.0
libtpu: 0.0.40
codegen_flags: <defaults>
</compile_context>

<pallas_src>
import functools

import numpy as np
import jax
import jax.numpy as jnp
from jax.experimental import pallas as pl
from jax.experimental.pallas import tpu as pltpu

NUM_JOINTS = 17
CONNECTIVITY = [(0, 1), (1, 2), (2, 6), (5, 4), (4, 3), (3, 6), (6, 7), (7, 8),
                (8, 16), (9, 16), (8, 12), (11, 12), (10, 11), (8, 13), (13, 14), (14, 15)]
NUM_EDGES = len(CONNECTIVITY)
TEMPERATURE = 10.0      # config.model.volume_net.temperature
CUBOID_SIZE = 250.0     # config.model.volume_net.cuboid_size


def build_group_index():
    gi = [[] for _ in range(NUM_JOINTS)]
    for e, (j0, j1) in enumerate(CONNECTIVITY):
        gi[j0].append((j1, e, 1))
        gi[j1].append((j0, e, 0))
    return gi


GROUP_INDEX = build_group_index()


# ---------------------------------------------------------------------------
# Pairwise attention masks (AttentionConv3D.calc_pairwise_atten).
# Emitted TRANSPOSED (mask_T[j, i] = mask[i, j]) and in bf16 so the main kernel can do a
# plain (rows, N) @ (N, N) MXU dot without an in-kernel transpose.  dis is exactly symmetric,
# so softmax over axis 0 == transpose of the module's softmax over dim 1, and the softmax is
# column-local, so the lane (column) tiling below is exact.
# ---------------------------------------------------------------------------
def _pairwise_mask_kernel(ms_ref, dis_ref, mask_ref):
    e = pl.program_id(1)
    mean = ms_ref[2 * e]
    std = ms_ref[2 * e + 1]
    inv_denom = 1.0 / (TEMPERATURE * 2.0 * std * std + 0.1)          # scalar
    logits = -jnp.square(dis_ref[...] - mean) * inv_denom            # (N, Tn)
    m = jnp.max(logits, axis=0, keepdims=True)
    p = jnp.exp(logits - m)
    inv_s = pl.reciprocal(jnp.sum(p, axis=0, keepdims=True), approx=True)
    mask_ref[0] = (p * inv_s).astype(mask_ref.dtype)


def grid_dis2(spatial_shape):
    """Squared pairwise grid distances (N, N) without materializing an (N, N, 3) delta."""
    gl = [CUBOID_SIZE / (s - 1) for s in spatial_shape]
    axes = [jnp.arange(s, dtype=jnp.float32) * g for s, g in zip(spatial_shape, gl)]
    xx, yy, zz = jnp.meshgrid(axes[0], axes[1], axes[2], indexing="ij")
    coords = jnp.stack([xx, yy, zz], axis=-1).reshape(-1, 3)                      # (N, 3)
    sq = jnp.sum(coords * coords, axis=1)                                         # (N,)
    gram = jnp.dot(coords, coords.T, precision=jax.lax.Precision.HIGHEST)         # (N, N)
    return jnp.maximum(sq[:, None] + sq[None, :] - 2.0 * gram, 0.0)


def compute_pairwise_masks(spatial_shape, limb_mean, limb_std):
    """Returns transposed bf16 masks of shape (NUM_EDGES, N, N)."""
    n = int(np.prod(spatial_shape))
    dis = jnp.sqrt(grid_dis2(spatial_shape))          # sqrt once in XLA, not 16x in-kernel
    ms = jnp.stack([limb_mean, limb_std], axis=1).reshape(-1).astype(jnp.float32)  # [m0,s0,...]

    tn = n                                            # column tile (bounds VMEM at large N)
    if n > 1024:
        for cand in (1024, 512, 256, 128):
            if n % cand == 0:
                tn = cand
                break

    return pl.pallas_call(
        _pairwise_mask_kernel,
        out_shape=jax.ShapeDtypeStruct((NUM_EDGES, n, n), jnp.bfloat16),
        grid=(n // tn, NUM_EDGES),                    # column-major: dis tile reused over edges
        in_specs=[pl.BlockSpec(memory_space=pltpu.MemorySpace.SMEM),
                  pl.BlockSpec((n, tn), lambda c, e: (0, c))],
        out_specs=pl.BlockSpec((1, n, tn), lambda c, e: (e, 0, c)),
        compiler_params=pltpu.CompilerParams(dimension_semantics=("parallel", "arbitrary")),
    )(ms, dis)


# ---------------------------------------------------------------------------
# Main AttentionConv3D forward kernel (Bt batch elements per grid step).
# Masks are streamed from HBM in groups of `mask_group` edges (manual double-buffer).
# ---------------------------------------------------------------------------
def _wedge_apply(wedge_sref, entry, diff, cpj):
    """corr[i, :] = sum_k wedge[entry, i, k] * diff[k, :]  (VPU scalar*vector MACs).
    (cpj x cpj) is far too small for a useful MXU push, so keep it off the MXU."""
    base = entry * cpj * cpj
    rows = []
    for i in range(cpj):
        acc = wedge_sref[base + i * cpj] * diff[0:1]
        for k in range(1, cpj):
            acc = acc + wedge_sref[base + i * cpj + k] * diff[k:k + 1]
        rows.append(acc)
    return jnp.concatenate(rows, axis=0)                                         # (cpj, n)


def _attention_conv3d_kernel(x_ref, wfused_ref, wflat_ref, wedge_sref, masks_hbm,
                             out_ref, atten_ref, mbuf, sem, *, mask_group):
    bt, c_in, n = x_ref.shape
    c_out = out_ref.shape[1]
    cpj = c_out // NUM_JOINTS
    rows_per_b = 2 * (cpj + 1)
    n_groups = NUM_EDGES // mask_group

    def group_copy(g, slot):
        return pltpu.make_async_copy(masks_hbm.at[pl.ds(g * mask_group, mask_group)],
                                     mbuf.at[slot], sem.at[slot])

    # Kick off the first mask-group DMA; it overlaps the conv/softmax/gating prologue.
    group_copy(0, 0).start()

    # ---- Prologue (statically unrolled over the Bt batch elements) ----
    joint_bf = []    # per (b, j): (cpj+1, n) bf16 = [gated features ; attention row]
    share_cols = []  # per (b, j): (cpj, 1) f32
    share_bc = []    # per (b, j): (cpj, n) f32 (hoisted lane broadcast)
    out_acc = []     # per (b, j): (cpj, n) f32 running output block
    for b in range(bt):
        xb = x_ref[b].astype(jnp.bfloat16)                                       # (c_in, n)
        # Fused grouped 1x1x1 convs (W_pi + atten_conv): one bf16 MXU dot, f32 accumulate.
        fused = jnp.dot(wfused_ref[...], xb, preferred_element_type=jnp.float32)  # (c_out+17, n)
        x_pi = fused[:c_out]
        logits = fused[c_out:]
        # Softmax over the flattened spatial axis (f32 elementwise, EUP reciprocal).
        m = jnp.max(logits, axis=1, keepdims=True)
        p = jnp.exp(logits - m)
        atten = p * pl.reciprocal(jnp.sum(p, axis=1, keepdims=True), approx=True)  # (17, n)
        atten_ref[b] = atten
        atten_bf = atten.astype(jnp.bfloat16)

        jrows, scols, sbc, oacc = [], [], [], []
        for j in range(NUM_JOINTS):
            axj = x_pi[j * cpj:(j + 1) * cpj] * atten[j:j + 1]                   # (cpj, n)
            jrows.append(jnp.concatenate([axj.astype(jnp.bfloat16),
                                          atten_bf[j:j + 1]], axis=0))           # (cpj+1, n)
            col = jnp.sum(axj, axis=1, keepdims=True)                            # (cpj, 1)
            scols.append(col)
            sbc.append(jnp.broadcast_to(col, (cpj, n)))                          # hoisted bcast
        joint_bf.append(jrows)
        share_cols.append(scols)
        share_bc.append(sbc)

        # Rank-1 "share" path: matvec instead of an O(c_out^2 * N) broadcast matmul.
        share_b = jnp.concatenate(scols, axis=0)                                 # (c_out, 1)
        wshare = jnp.dot(wflat_ref[...], share_b.astype(jnp.bfloat16),
                         preferred_element_type=jnp.float32)                     # (c_out, 1)
        for j in range(NUM_JOINTS):
            oacc.append(x_pi[j * cpj:(j + 1) * cpj] + wshare[j * cpj:(j + 1) * cpj])
        out_acc.append(oacc)

    # ---- Edge loop: masks streamed from HBM, all Bt batch elements share one MXU dot ----
    for g in range(n_groups):
        slot = g & 1
        group_copy(g, slot).wait()
        if g + 1 < n_groups:
            group_copy(g + 1, 1 - slot).start()                                  # prefetch next
        for le in range(mask_group):
            e = g * mask_group + le
            ja, jb = CONNECTIVITY[e]
            mask_t = mbuf[slot, le]                                              # (n, n) bf16, transposed

            rows = []
            for b in range(bt):
                rows += [joint_bf[b][ja], joint_bf[b][jb]]
            lhs = jnp.concatenate(rows, axis=0)                                  # (bt*rows_per_b, n)
            res = jnp.dot(lhs, mask_t, preferred_element_type=jnp.float32)

            for b in range(bt):
                off = b * rows_per_b
                num_a = res[off:off + cpj]
                den_a = res[off + cpj:off + cpj + 1]
                num_b = res[off + cpj + 1:off + 2 * cpj + 1]
                den_b = res[off + 2 * cpj + 1:off + 2 * cpj + 2]
                feat_a = num_a * pl.reciprocal(den_a, approx=True)
                feat_b = num_b * pl.reciprocal(den_b, approx=True)
                # wedge[2e]   = wconv[ja][:, jb-block] acting on joint jb's feature (added to ja)
                # wedge[2e+1] = wconv[jb][:, ja-block] acting on joint ja's feature (added to jb)
                out_acc[b][ja] = out_acc[b][ja] + _wedge_apply(
                    wedge_sref, 2 * e, feat_b - share_bc[b][jb], cpj)
                out_acc[b][jb] = out_acc[b][jb] + _wedge_apply(
                    wedge_sref, 2 * e + 1, feat_a - share_bc[b][ja], cpj)

    # ---- One lane-dense (c_out, N) store per batch element ----
    for b in range(bt):
        out_ref[b] = jnp.concatenate(out_acc[b], axis=0)


def _pick_mask_group(n):
    """Edges per mask DMA: amortize DMA issue latency at small N, bound VMEM at large N."""
    budget = 12 * 1024 * 1024
    for g in (4, 2, 1):
        if NUM_EDGES % g == 0 and 2 * g * n * n * 2 <= budget:
            return g
    return 1


def _vmem_limit(bt, c_in, c_out, n, mask_group):
    """Derived from actual buffer sizes; capped at 64 MiB so it is valid on v7x."""
    mask_scratch = 2 * mask_group * n * n * 2
    blocks = 2 * bt * n * 4 * (c_in + c_out + NUM_JOINTS)            # double-buffered blocks
    weights = 2 * ((c_out + NUM_JOINTS) * c_in + c_out * c_out) * 2
    temps = bt * c_out * n * 4 * 8                                   # x_pi/joint slabs/out_acc/...
    need = mask_scratch + blocks + weights + temps + (2 << 20)
    return int(min(64 * 1024 * 1024, max(16 * 1024 * 1024, 2 * need)))


def attention_conv3d_forward(x_flat, wpi_dense, watt_dense, wconv, masks_t, bt=None):
    """x_flat: (B, C_in, N); wconv: (17, cpj, C_out); masks_t: transposed bf16 masks."""
    b, c_in, n = x_flat.shape
    c_out = wconv.shape[0] * wconv.shape[1]
    cpj = c_out // NUM_JOINTS
    rows_per_b = 2 * (cpj + 1)

    if bt is None:
        # Largest divisor of B that still keeps the per-edge LHS <= ~128 MXU rows.
        target = max(1, 128 // rows_per_b)
        bt = 1
        for d in range(1, b + 1):
            if b % d == 0 and d <= target:
                bt = d
    assert b % bt == 0

    mask_group = _pick_mask_group(n)

    # Host-side weight packing.
    wfused = jnp.concatenate([wpi_dense, watt_dense], axis=0).astype(jnp.bfloat16)  # (c_out+17, c_in)
    wflat = wconv.reshape(c_out, c_out).astype(jnp.bfloat16)
    wedge_list = []
    for ja, jb in CONNECTIVITY:
        wedge_list.append(wconv[ja][:, jb * cpj:(jb + 1) * cpj])
        wedge_list.append(wconv[jb][:, ja * cpj:(ja + 1) * cpj])
    wedge_flat = jnp.stack(wedge_list, axis=0).reshape(-1).astype(jnp.float32)      # (2E*cpj*cpj,)

    kernel = functools.partial(_attention_conv3d_kernel, mask_group=mask_group)

    out, atten = pl.pallas_call(
        kernel,
        out_shape=(jax.ShapeDtypeStruct((b, c_out, n), jnp.float32),
                   jax.ShapeDtypeStruct((b, NUM_JOINTS, n), jnp.float32)),
        grid=(b // bt,),
        in_specs=[pl.BlockSpec((bt, c_in, n), lambda i: (i, 0, 0)),
                  pl.BlockSpec((c_out + NUM_JOINTS, c_in), lambda i: (0, 0)),
                  pl.BlockSpec((c_out, c_out), lambda i: (0, 0)),
                  pl.BlockSpec(memory_space=pltpu.MemorySpace.SMEM),              # wedge scalars
                  pl.BlockSpec(memory_space=pl.ANY)],                             # masks stay in HBM
        out_specs=(pl.BlockSpec((bt, c_out, n), lambda i: (i, 0, 0)),
                   pl.BlockSpec((bt, NUM_JOINTS, n), lambda i: (i, 0, 0))),
        scratch_shapes=[pltpu.VMEM((2, mask_group, n, n), jnp.bfloat16),           # mask double-buffer
                        pltpu.SemaphoreType.DMA((2,))],
        compiler_params=pltpu.CompilerParams(
            dimension_semantics=("parallel",),
            vmem_limit_bytes=_vmem_limit(bt, c_in, c_out, n, mask_group)),
    )(x_flat, wfused, wflat, wedge_flat, masks_t)
    return out, atten


# ---------------------------------------------------------------------------
# Deterministic parameter construction (synthetic; matches module __init__ shapes).
# ---------------------------------------------------------------------------
def make_params(key, c_in, c_out):
    cinpj = c_in // NUM_JOINTS
    copj = c_out // NUM_JOINTS
    k1, k2, k3 = jax.random.split(key, 3)
    # W_pi: Conv3d(c_in, c_out, 1, groups=17, bias=False) -> weight (c_out, c_in//17)
    wpi = jax.random.normal(k1, (c_out, cinpj), jnp.float32) / np.sqrt(cinpj)
    # atten_conv: Conv3d(c_in, 17, 1, groups=17, bias=False) -> weight (17, c_in//17)
    watt = jax.random.normal(k2, (NUM_JOINTS, cinpj), jnp.float32) / np.sqrt(cinpj)
    # convlist: 17 x Conv3d(c_out, c_out//17, 1, bias=False), xavier-normal scale
    gain = np.sqrt(2.0 / (c_out + copj))
    wconv = jax.random.normal(k3, (NUM_JOINTS, copj, c_out), jnp.float32) * gain

    # Dense block-diagonal forms of the grouped convs (fine at these channel counts).
    wpi_dense = jnp.zeros((c_out, c_in), jnp.float32)
    watt_dense = jnp.zeros((NUM_JOINTS, c_in), jnp.float32)
    for g in range(NUM_JOINTS):
        wpi_dense = wpi_dense.at[g * copj:(g + 1) * copj, g * cinpj:(g + 1) * cinpj].set(
            wpi[g * copj:(g + 1) * copj])
        watt_dense = watt_dense.at[g, g * cinpj:(g + 1) * cinpj].set(watt[g])
    return wpi_dense, watt_dense, wconv


# ---------------------------------------------------------------------------
# Pure-JAX reference (mirrors the PyTorch forward) for validation.
# ---------------------------------------------------------------------------
def reference_forward(x_flat, wpi_dense, watt_dense, wconv, masks_orig, cpj):
    hp = jax.lax.Precision.HIGHEST
    n = x_flat.shape[2]
    x_pi = jnp.einsum("oc,bcn->bon", wpi_dense, x_flat, precision=hp)
    logits = jnp.einsum("jc,bcn->bjn", watt_dense, x_flat, precision=hp)
    atten = jax.nn.softmax(logits, axis=2)
    ax_group = [x_pi[:, j * cpj:(j + 1) * cpj] * atten[:, j:j + 1] for j in range(NUM_JOINTS)]
    share = jnp.concatenate([a.sum(axis=2) for a in ax_group], axis=1)            # (B, C_out)
    feats = {}
    for e, (j0, j1) in enumerate(CONNECTIVITY):
        mask = masks_orig[e]                                                      # mask[i, j]
        for side, joint in enumerate((j0, j1)):
            num = jnp.einsum("bcj,ij->bci", ax_group[joint], mask, precision=hp)
            den = jnp.einsum("bj,ij->bi", atten[:, joint], mask, precision=hp)
            feats[(e, side)] = num / den[:, None, :]
    outs = []
    for j0 in range(NUM_JOINTS):
        assembled = jnp.broadcast_to(share[:, :, None], share.shape + (n,))
        for (j1, e, side) in GROUP_INDEX[j0]:
            assembled = assembled.at[:, j1 * cpj:(j1 + 1) * cpj, :].set(feats[(e, side)])
        outs.append(jnp.einsum("oc,bcn->bon", wconv[j0], assembled, precision=hp))
    out = jnp.concatenate(outs, axis=1) + x_pi
    return out, atten


if __name__ == "__main__":
    B = 2
    C_IN = 2 * NUM_JOINTS    # 34
    C_OUT = 2 * NUM_JOINTS   # 34
    D, H, W = 4, 4, 8        # N = 128 -> lane-dense minor dimension (production: keep N % 128 == 0)
    N = D * H * W
    CPJ = C_OUT // NUM_JOINTS

    key = jax.random.PRNGKey(0)
    kx, kp = jax.random.split(key)
    x_ncdhw = jax.random.normal(kx, (B, C_IN, D, H, W), jnp.float32)
    x_flat = x_ncdhw.reshape(B, C_IN, N)

    wpi_dense, watt_dense, wconv = make_params(kp, C_IN, C_OUT)

    # TODO(synk): limb mean/std come from an h5 file (config.train.limb_length_path) in the
    # original module; synthesized deterministically here.
    limb_mean = jnp.linspace(40.0, 160.0, NUM_EDGES).astype(jnp.float32)
    limb_std = jnp.linspace(8.0, 24.0, NUM_EDGES).astype(jnp.float32)

    masks_t = compute_pairwise_masks((D, H, W), limb_mean, limb_std)              # (16, N, N) bf16, transposed
    out, atten = attention_conv3d_forward(x_flat, wpi_dense, watt_dense, wconv, masks_t)
    out = jax.block_until_ready(out)
    atten = jax.block_until_ready(atten)
    out_ncdhw = out.reshape(B, C_OUT, D, H, W)                                    # module output shape

    # --- Sanity checks against pure-JAX references (loose tolerances: bf16 + approx recip) ---
    masks_f32 = masks_t.astype(jnp.float32)
    col_sums = np.asarray(jnp.sum(masks_f32, axis=1))        # transposed masks normalize over axis 1
    np.testing.assert_allclose(col_sums, np.ones_like(col_sums), rtol=2e-2, atol=2e-2)

    dis = jnp.sqrt(grid_dis2((D, H, W)))
    ref_masks_t = jnp.stack([
        jax.nn.softmax(-jnp.square(dis - limb_mean[e]) / (TEMPERATURE * 2.0 * limb_std[e] ** 2 + 0.1),
                       axis=0) for e in range(NUM_EDGES)])
    np.testing.assert_allclose(np.asarray(masks_f32), np.asarray(ref_masks_t), rtol=5e-2, atol=2e-3)

    masks_orig = jnp.swapaxes(masks_f32, 1, 2)               # back to module orientation for the reference
    ref_out, ref_atten = reference_forward(x_flat, wpi_dense, watt_dense, wconv, masks_orig, CPJ)
    np.testing.assert_allclose(np.asarray(atten), np.asarray(ref_atten), rtol=5e-2, atol=1e-3)
    np.testing.assert_allclose(np.asarray(out), np.asarray(ref_out), rtol=5e-2, atol=2e-2)

    print("KERNEL_OK")
</pallas_src>

<mosaic_0001>
module attributes {stable_mosaic.version = 11 : i64} {
  func.func @_pairwise_mask_kernel(%arg0: i32, %arg1: i32, %arg2: memref<32xf32, #tpu.memory_space<smem>>, %arg3: memref<128x128xf32, #tpu.memory_space<vmem>>, %arg4: memref<1x128x128xbf16, #tpu.memory_space<vmem>>) attributes {dimension_semantics = [#tpu.dimension_semantics<parallel>, #tpu.dimension_semantics<arbitrary>], iteration_bounds = array<i64: 1, 16>, scalar_prefetch = 0 : i64, scratch_operands = 0 : i64, tpu.core_type = #tpu.core_type<tc>, window_params = [{transform_indices = @transform_0, window_bounds = array<i64: 32>}, {transform_indices = @transform_1, window_bounds = array<i64: 128, 128>}, {transform_indices = @transform_2, window_bounds = array<i64: 1, 128, 128>}]} {
    %c2_i32 = arith.constant 2 : i32
    %0 = arith.muli %c2_i32, %arg1 : i32
    %1 = arith.index_cast %0 : i32 to index
    %2 = memref.load %arg2[%1] : memref<32xf32, #tpu.memory_space<smem>>
    %c2_i32_0 = arith.constant 2 : i32
    %3 = arith.muli %c2_i32_0, %arg1 : i32
    %c1_i32 = arith.constant 1 : i32
    %4 = arith.addi %3, %c1_i32 : i32
    %5 = arith.index_cast %4 : i32 to index
    %6 = memref.load %arg2[%5] : memref<32xf32, #tpu.memory_space<smem>>
    %cst = arith.constant 2.000000e+01 : f32
    %7 = arith.mulf %cst, %6 : f32
    %8 = arith.mulf %7, %6 : f32
    %cst_1 = arith.constant 1.000000e-01 : f32
    %9 = arith.addf %8, %cst_1 : f32
    %cst_2 = arith.constant 1.000000e+00 : f32
    %10 = arith.divf %cst_2, %9 : f32
    %c0 = arith.constant 0 : index
    %c0_3 = arith.constant 0 : index
    %11 = vector.load %arg3[%c0, %c0_3] : memref<128x128xf32, #tpu.memory_space<vmem>>, vector<128x128xf32>
    %12 = vector.broadcast %2 : f32 to vector<128x128xf32>
    %13 = arith.subf %11, %12 : vector<128x128xf32>
    %14 = arith.mulf %13, %13 : vector<128x128xf32>
    %cst_4 = arith.constant 0.000000e+00 : f32
    %15 = vector.broadcast %cst_4 : f32 to vector<128x128xf32>
    %16 = arith.subf %15, %14 : vector<128x128xf32>
    %17 = vector.broadcast %10 : f32 to vector<128x128xf32>
    %18 = arith.mulf %16, %17 : vector<128x128xf32>
    %cst_5 = arith.constant dense<0xFF800000> : vector<128xf32>
    %19 = vector.multi_reduction <maximumf>, %18, %cst_5 [0] : vector<128x128xf32> to vector<128xf32>
    %20 = vector.shape_cast %19 : vector<128xf32> to vector<1x128xf32>
    %21 = vector.broadcast %20 : vector<1x128xf32> to vector<128x128xf32>
    %22 = arith.subf %18, %21 : vector<128x128xf32>
    %23 = math.exp %22 : vector<128x128xf32>
    %cst_6 = arith.constant dense<0.000000e+00> : vector<128xf32>
    %24 = vector.multi_reduction <add>, %23, %cst_6 [0] : vector<128x128xf32> to vector<128xf32>
    %25 = vector.shape_cast %24 : vector<128xf32> to vector<1x128xf32>
    %26 = tpu.reciprocal %25 {approx = true} : vector<1x128xf32> -> vector<1x128xf32>
    %27 = vector.broadcast %26 : vector<1x128xf32> to vector<128x128xf32>
    %28 = arith.mulf %23, %27 : vector<128x128xf32>
    %29 = arith.truncf %28 : vector<128x128xf32> to vector<128x128xbf16>
    %c0_7 = arith.constant 0 : index
    %c0_8 = arith.constant 0 : index
    %c0_9 = arith.constant 0 : index
    %30 = vector.load %arg4[%c0_7, %c0_8, %c0_9] : memref<1x128x128xbf16, #tpu.memory_space<vmem>>, vector<1x128x128xbf16>
    %31 = vector.shape_cast %30 : vector<1x128x128xbf16> to vector<128x128xbf16>
    %32 = vector.shape_cast %29 : vector<128x128xbf16> to vector<1x128x128xbf16>
    tpu.vector_store %arg4[%c0_7, %c0_8, %c0_9], %32 {strides = array<i32>} : memref<1x128x128xbf16, #tpu.memory_space<vmem>>, vector<1x128x128xbf16>,
    return
  }
  func.func @transform_0(%arg0: i32, %arg1: i32) -> i32 {
    %c0_i32 = arith.constant 0 : i32
    %c0_i32_0 = arith.constant 0 : i32
    return %c0_i32 : i32
  }
  func.func @transform_1(%arg0: i32, %arg1: i32) -> (i32, i32) {
    %c0_i32 = arith.constant 0 : i32
    %c0_i32_0 = arith.constant 0 : i32
    return %c0_i32, %arg0 : i32, i32
  }
  func.func @transform_2(%arg0: i32, %arg1: i32) -> (i32, i32, i32) {
    %c0_i32 = arith.constant 0 : i32
    %c0_i32_0 = arith.constant 0 : i32
    return %arg1, %c0_i32, %arg0 : i32, i32, i32
  }
}

</mosaic_0001>

<bundles_post_ra>
// kernel: tpu_custom_call.1
= control target key start
LH: loop header
LB: loop body
LE: loop exit
PB: predicated region body
PF: predicated region fallthrough
CT: control target
= control target key end

     0   :  { %7 = vsyncpa [#allocation5], 0  ;;  %s1080_s0 = inlined_call_operand.hbm [shape: f32[32], index: 0, kind: input, shape index: {}]   ;;  %s1081_s1 = inlined_call_operand.hbm [shape: f32[128,128], index: 1, kind: input, shape index: {}]   ;;  %s1082_s2 = inlined_call_operand.hbm [shape: bf16[16,128,128], index: 2, kind: output, shape index: {}]  }
   0x1   :  { %8 = vsyncpa [#allocation3], 0 }
   0x2   :  { %9 = vsyncpa [#allocation4], 0 }
   0x3   :  { %11 = vsyncpa [#allocation4 + $0x1], 0  ;;  %s908_s9 = smov 0   ;;  %s910_s10 = smov 0  }
   0x4   :  { %s912_s11 = smov 0   ;;  %s914_s12 = smov 0  }
   0x5   :  { %s916_s13 = smov 0   ;;  %s918_s14 = smov 0  }
   0x6 LB: > { %s550_s15 = sadd.s32 4294967295, %s884_s14   ;;  %s551_s16 = sadd.s32 4294967294, %s884_s14   ;;  %s884_s14 = sphi %s918_s14, %s17_s14   ;;  %s880_s13 = sphi %s916_s13, %s1092_s13   ;;  %s876_s12 = sphi %s914_s12, %s1091_s12   ;;  %s872_s11 = sphi %s912_s11, %s1090_s11   ;;  %s868_s10 = sphi %s910_s10, %s1089_s10   ;;  %s864_s9 = sphi %s908_s9, %s1088_s9  }
   0x7   : > { %s26_s17 = sadd.s32 1, %s880_s13  ;;  %s85_s18 = sadd.s32 1, %s872_s11 }
   0x8   : > { %p27_p0 = scmp.ge.s32.totalorder %s26_s17, 16  ;;  %p95_p1 = scmp.ne.s32.totalorder %s872_s11, %s868_s10 }
   0x9   : > { %p96_p2 = scmp.eq.s32.totalorder %s550_s15, 15  ;;  %p101_p3 = scmp.ne.s32.totalorder %s868_s10, %s864_s9 }
   0xa   : > { %s1094_s17 = smov (%p27_p0, %s26_s17), 0  ;;  %p102_p5 = scmp.eq.s32.totalorder %s551_s16, 15 }
   0xb   : > { %p948_p4 = por %p96_p2, %p95_p1  ;;  %s80_s20 = ssub.s32 %s880_s13, %s1094_s17 }
   0xc   : > { %p552_p6 = scmp.ge.s32.totalorder %s884_s14, 1  ;;  %p83_p7 = scmp.eq.s32.totalorder %s80_s20, 0 }
   0xd   : > { %p955_p8 = por %p102_p5, %p101_p3  ;;  %p109_p9 = scmp.lt.s32.totalorder %s884_s14, 17 }
   0xe   : > { %s961_s22 = scalar_select %p83_p7, %s872_s11, %s85_s18  }
   0xf   : > { %p963_p10 = pnand %p552_p6, %p109_p9  ;;  %p967_p11 = scmp.eq.s32.totalorder %s550_s15, 0 }
  0x10   : > { %s886_s25 = smov [#allocation6]   ;;  %s887_s28 = smov [#allocation2]  }
  0x11   : > { %p657_p12 = pneg %p963_p10  ;;  %s132_s26 = sshll.u32 %s886_s25, 4  ;;  %s133_s26 = int_to_ptr.vmem [resolvable:$true] %s132_s26 }
  0x12   : > { %s785_s3 = scalar_lea.vmem %s133_s26, 2048  ;;  %p793_p5 = scmp.lt.s32.totalorder %s133_s26, %s133_s26 }
  0x13   : > { %p975_p13 = pnand %p967_p11, %p657_p12  ;;  %p786_p1 = scmp.ne.s32.totalorder %s133_s26, %s785_s3 }
  0x14   : > { %p794_p6 = scmp.lt.s32.totalorder %s785_s3, %s785_s3 }
  0x15   : > { %660 = dma.hbm_to_smem (!%p975_p13), %s1080_s0, 16, %s887_s28, [#allocation5]  }
  0x16   : > { %p776_p0 = pneg %p975_p13  ;;  %p795_p7 = por %p794_p6, %p793_p5 }
  0x18   : > { %p788_p2 = pnand %p786_p1, %p776_p0 }
  0x1a   : > { %p789_p3 = pneg %p788_p2 }
  0x1c   : > { %p796_p9 = pnand %p795_p7, %p789_p3 }
  0x1e   : > { %799 = shalt.err (!%p796_p9)
}
  0x1f   : > { %s888_s4 = smov 128   ;;  %s889_s5 = smov 8  }
  0x20   : > { %663 = dma.hbm_to_vmem [thread:$0]  (!%p975_p13), %s1081_s1, 2048, %s133_s26, [#allocation3], %s888_s4, %s888_s4, %s889_s5  }
  0x21   : > { %148 = sbr.rel (%p963_p10) target bundleno = 246 (0xf6), region = 28 }
  0x26   : > { %851 = dma.done.wait (%p967_p11), [#allocation5], 16  }
  0x27   : > { %853 = vsyncadd (%p967_p11), [#allocation5], 4294967280 }
  0x28   : > { %855 = dma.done.wait (%p967_p11), [#allocation3], 2048  }
  0x29   : > { %857 = vsyncadd (%p967_p11), [#allocation3], 4294965248 }
  0x2a   : > { %158 = sfence }
  0x2b   : > { %s559_s8 = sshll.u32 %s876_s12, 1  ;;  %v180_v2 = vld [vmem:[#allocation6] sm:$0xff]  ;;  %v181_v3 = vld [vmem:[#allocation6 + $0x8] sm:$0xff]  ;;  %v182_v4 = vld [vmem:[#allocation6 + $0x10] sm:$0xff]  ;;  %s167_s26 = sand.u32 1, %s868_s10  }
  0x2c   : > { %s172_s15 = sadd.s32 1, %s559_s8  ;;  %s171_s25 = sld [smem:[#allocation2 + %s559_s8]]  ;;  %v183_v5 = vld [vmem:[#allocation6 + $0x18] sm:$0xff]  ;;  %v184_v7 = vld [vmem:[#allocation6 + $0x20] sm:$0xff]  ;;  %v185_v8 = vld [vmem:[#allocation6 + $0x28] sm:$0xff] }
  0x2d   : > { %s173_s16 = sld [smem:[#allocation2 + %s172_s15]]  ;;  %v186_v9 = vld [vmem:[#allocation6 + $0x30] sm:$0xff]  ;;  %v187_v10 = vld [vmem:[#allocation6 + $0x38] sm:$0xff]  ;;  %v188_v11 = vld [vmem:[#allocation6 + $0x40] sm:$0xff]  ;;  %s558_s27 = sshll.u32 %s167_s26, 6 }
  0x2e   : > { %v189_v12 = vld [vmem:[#allocation6 + $0x48] sm:$0xff]  ;;  %v190_v13 = vld [vmem:[#allocation6 + $0x50] sm:$0xff]  ;;  %v191_v14 = vld [vmem:[#allocation6 + $0x58] sm:$0xff]  ;;  %s597_s28 = sshll.u32 %s876_s12, 10  ;;  %s169_s29 = scalar_lea.vmem [#allocation7], %s558_s27 }
  0x2f   : > { %v192_v15 = vld [vmem:[#allocation6 + $0x60] sm:$0xff]  ;;  %v193_v17 = vld [vmem:[#allocation6 + $0x68] sm:$0xff]  ;;  %v194_v18 = vld [vmem:[#allocation6 + $0x70] sm:$0xff]  ;;  %s464_s30 = sshll.u32 %s169_s29, 4  ;;  %s1029_s5 = scalar_lea.hbm %s1082_s2, %s597_s28  ;;  %s1031_s30 = int_to_ptr.vmem [resolvable:$true] %s464_s30 }
  0x30   : > { %v195_v19 = vld [vmem:[#allocation6 + $0x78] sm:$0xff]  ;;  %s1035_s12 = scalar_lea.sflag [#allocation4], %s167_s26  ;;  %s800_s6 = scalar_lea.vmem %s1031_s30, 1024 }
  0x31   : > { %p801_p10 = scmp.ne.s32.totalorder %s1031_s30, %s800_s6  ;;  %s890_s7 = smov [#allocation7]  }
  0x32   : > { %v196_v6 = vstv %s171_s25  ;;  %s804_s8 = sshll.u32 %s890_s7, 4  ;;  %s805_s8 = int_to_ptr.vmem [resolvable:$false] %s804_s8 }
  0x33   : > { %s174_s18 = smul.f32 20.0, %s173_s16  ;;  %v197_v16 = vsub.f32 %v180_v2, %v196_v6  ;;  %v198_v20 = vsub.f32 %v181_v3, %v196_v6  ;;  %v199_v21 = vsub.f32 %v182_v4, %v196_v6  ;;  %v200_v22 = vsub.f32 %v183_v5, %v196_v6  ;;  %p802_p11 = pnand %p801_p10, %p948_p4 }
  0x34   : > { %v201_v23 = vsub.f32 %v184_v7, %v196_v6  ;;  %v202_v24 = vsub.f32 %v185_v8, %v196_v6  ;;  %v203_v25 = vsub.f32 %v186_v9, %v196_v6  ;;  %v204_v26 = vsub.f32 %v187_v10, %v196_v6  ;;  %s806_s15 = scalar_lea.vmem %s805_s8, 2048  ;;  %p807_p13 = scmp.lt.s32.totalorder %s1031_s30, %s805_s8 }
  0x35   : > { %s175_s20 = smul.f32 %s174_s18, %s173_s16  ;;  %v205_v27 = vsub.f32 %v188_v11, %v196_v6  ;;  %v206_v28 = vsub.f32 %v189_v12, %v196_v6  ;;  %v207_v29 = vsub.f32 %v190_v13, %v196_v6  ;;  %v208_v30 = vsub.f32 %v191_v14, %v196_v6  ;;  %p803_p12 = pneg %p802_p11 }
  0x36   : > { %v209_v31 = vsub.f32 %v192_v15, %v196_v6  ;;  %v210_v32 = vsub.f32 %v193_v17, %v196_v6  ;;  %v211_v33 = vsub.f32 %v194_v18, %v196_v6  ;;  %v212_v34 = vsub.f32 %v195_v19, %v196_v6  ;;  %p808_p0 = scmp.lt.s32.totalorder %s806_s15, %s800_s6 }
  0x37   : > { %s176_s23 = sadd.f32 0.1, %s175_s20  ;;  %v213_v35 = vmul.f32 %v197_v16, %v197_v16  ;;  %v214_v36 = vmul.f32 %v198_v20, %v198_v20  ;;  %v215_v37 = vmul.f32 %v199_v21, %v199_v21  ;;  %v216_v38 = vmul.f32 %v200_v22, %v200_v22 }
  0x38   : > { %v217_v39 = vmul.f32 %v201_v23, %v201_v23  ;;  %v218_v40 = vmul.f32 %v202_v24, %v202_v24  ;;  %v219_v41 = vmul.f32 %v203_v25, %v203_v25  ;;  %v220_v42 = vmul.f32 %v204_v26, %v204_v26  ;;  %p809_p1 = por %p808_p0, %p807_p13 }
  0x39   : > { %v177_v0 = vstv %s176_s23  ;;  %v221_v43 = vmul.f32 %v205_v27, %v205_v27  ;;  %v222_v44 = vmul.f32 %v206_v28, %v206_v28  ;;  %v223_v45 = vmul.f32 %v207_v29, %v207_v29 }
  0x3a   : > { %727 = vrcp.f32 %v177_v0  ;;  %v224_v46 = vmul.f32 %v208_v30, %v208_v30  ;;  %v225_v47 = vmul.f32 %v209_v31, %v209_v31  ;;  %v226_v48 = vmul.f32 %v210_v32, %v210_v32  ;;  %p810_p2 = pnand %p809_p1, %p803_p12 }
  0x3b   : > { %v227_v49 = vmul.f32 %v211_v33, %v211_v33  ;;  %v228_v50 = vmul.f32 %v212_v34, %v212_v34  ;;  %v229_v51 = vsub.f32 0.0, %v213_v35  ;;  %v230_v52 = vsub.f32 0.0, %v214_v36 }
  0x3c   : > { %v231_v53 = vsub.f32 0.0, %v215_v37  ;;  %v232_v54 = vsub.f32 0.0, %v216_v38  ;;  %v233_v55 = vsub.f32 0.0, %v217_v39  ;;  %v234_v56 = vsub.f32 0.0, %v218_v40 }
  0x3d   : > { %v235_v57 = vsub.f32 0.0, %v219_v41  ;;  %v236_v58 = vsub.f32 0.0, %v220_v42  ;;  %v237_v59 = vsub.f32 0.0, %v221_v43  ;;  %v238_v60 = vsub.f32 0.0, %v222_v44 }
  0x3e   : > { %v239_v61 = vsub.f32 0.0, %v223_v45  ;;  %v240_v62 = vsub.f32 0.0, %v224_v46  ;;  %v241_v63 = vsub.f32 0.0, %v225_v47  ;;  %v242_v0 = vsub.f32 0.0, %v226_v48 }
  0x3f   : > { %v244_v2 = vsub.f32 0.0, %v228_v50 }
  0x47   : > { %v728_v1 = vpop.eup %727 }
  0x48   : > { %645 = vpush %v728_v1  ;;  %v243_v1 = vsub.f32 0.0, %v227_v49 }
  0x79   : > { %s646_s24 = spop %645 }
  0x7a   : > { %v245_v3 = vstv %s646_s24 }
  0x7b   : > { %v246_v4 = vmul.f32 %v245_v3, %v229_v51  ;;  %v247_v5 = vmul.f32 %v245_v3, %v230_v52  ;;  %v248_v6 = vmul.f32 %v245_v3, %v231_v53  ;;  %v249_v7 = vmul.f32 %v245_v3, %v232_v54 }
  0x7c   : > { %v250_v8 = vmul.f32 %v245_v3, %v233_v55  ;;  %v251_v9 = vmul.f32 %v245_v3, %v234_v56  ;;  %v252_v10 = vmul.f32 %v245_v3, %v235_v57  ;;  %v253_v11 = vmul.f32 %v245_v3, %v236_v58 }
  0x7d   : > { %v254_v12 = vmul.f32 %v245_v3, %v237_v59  ;;  %v255_v13 = vmul.f32 %v245_v3, %v238_v60  ;;  %v256_v14 = vmul.f32 %v245_v3, %v239_v61  ;;  %v1002_v15 = vmul.f32 %v245_v3, %v240_v62 }
  0x7e   : > { %v262_v16 = vmax.f32 %v246_v4, %v250_v8  ;;  %v263_v17 = vmax.f32 %v247_v5, %v251_v9  ;;  %v264_v18 = vmax.f32 %v248_v6, %v252_v10  ;;  %v265_v19 = vmax.f32 %v249_v7, %v253_v11 }
  0x7f   : > { %v1004_v20 = vmul.f32 %v245_v3, %v241_v63  ;;  %v1006_v21 = vmul.f32 %v245_v3, %v242_v0  ;;  %v1008_v22 = vmul.f32 %v245_v3, %v243_v1  ;;  %v1010_v23 = vmul.f32 %v245_v3, %v244_v2 }
  0x80   : > { %v266_v24 = vmax.f32 %v262_v16, %v254_v12  ;;  %v267_v25 = vmax.f32 %v263_v17, %v255_v13  ;;  %v268_v26 = vmax.f32 %v264_v18, %v256_v14  ;;  %v269_v27 = vmax.f32 %v265_v19, %v1002_v15 }
  0x82   : > { %v270_v28 = vmax.f32 %v266_v24, %v1004_v20  ;;  %v271_v29 = vmax.f32 %v267_v25, %v1006_v21  ;;  %v272_v30 = vmax.f32 %v268_v26, %v1008_v22  ;;  %v273_v31 = vmax.f32 %v269_v27, %v1010_v23 }
  0x84   : > { %v274_v32 = vmax.f32 %v270_v28, %v271_v29  ;;  %v275_v33 = vmax.f32 %v272_v30, %v273_v31 }
  0x86   : > { %v276_v34 = vmax.f32 %v274_v32, %v275_v33 }
  0x88   : > { %v277_v35 = vrot.slane %v276_v34, 4 }
  0x8a   : > { %v278_v36 = vmax.f32 %v276_v34, %v277_v35 }
  0x8c   : > { %v279_v37 = vrot.slane %v278_v36, 2 }
  0x8e   : > { %v280_v38 = vmax.f32 %v278_v36, %v279_v37 }
  0x90   : > { %v281_v39 = vrot.slane %v280_v38, 1 }
  0x92   : > { %v282_v40 = vmax.f32 %v280_v38, %v281_v39 }
  0x94   : > { %v283_v41 = vsub.f32 %v246_v4, %v282_v40  ;;  %v284_v42 = vsub.f32 %v247_v5, %v282_v40  ;;  %v285_v43 = vsub.f32 %v248_v6, %v282_v40  ;;  %v286_v44 = vsub.f32 %v249_v7, %v282_v40 }
  0x95   : > { %v287_v47 = vsub.f32 %v250_v8, %v282_v40  ;;  %v288_v49 = vsub.f32 %v251_v9, %v282_v40  ;;  %v289_v51 = vsub.f32 %v252_v10, %v282_v40  ;;  %v290_v53 = vsub.f32 %v253_v11, %v282_v40 }
  0x96   : > { %v299_v45 = vmul.f32 1.442695, %v283_v41  ;;  %v301_v46 = vmul.f32 1.442695, %v284_v42  ;;  %v303_v48 = vmul.f32 1.442695, %v285_v43  ;;  %v291_v55 = vsub.f32 %v254_v12, %v282_v40 }
  0x97   : > { %v305_v50 = vmul.f32 1.442695, %v286_v44  ;;  %v307_v52 = vmul.f32 1.442695, %v287_v47  ;;  %v309_v54 = vmul.f32 1.442695, %v288_v49  ;;  %v292_v57 = vsub.f32 %v255_v13, %v282_v40 }
  0x98   : > { %729 = vpow2.f32 %v299_v45  ;;  %v311_v56 = vmul.f32 1.442695, %v289_v51  ;;  %v313_v58 = vmul.f32 1.442695, %v290_v53  ;;  %v293_v59 = vsub.f32 %v256_v14, %v282_v40 }
  0x99   : > { %731 = vpow2.f32 %v301_v46  ;;  %v315_v60 = vmul.f32 1.442695, %v291_v55  ;;  %v294_v62 = vsub.f32 %v1002_v15, %v282_v40  ;;  %v317_v63 = vmul.f32 1.442695, %v292_v57 }
  0x9a   : > { %733 = vpow2.f32 %v303_v48  ;;  %v295_v1 = vsub.f32 %v1004_v20, %v282_v40  ;;  %v319_v2 = vmul.f32 1.442695, %v293_v59  ;;  %v296_v5 = vsub.f32 %v1006_v21, %v282_v40 }
  0x9b   : > { %735 = vpow2.f32 %v305_v50  ;;  %v321_v6 = vmul.f32 1.442695, %v294_v62  ;;  %v297_v9 = vsub.f32 %v1008_v22, %v282_v40  ;;  %v298_v13 = vsub.f32 %v1010_v23, %v282_v40 }
  0x9c   : > { %737 = vpow2.f32 %v307_v52  ;;  %v323_v10 = vmul.f32 1.442695, %v295_v1  ;;  %v325_v14 = vmul.f32 1.442695, %v296_v5 }
  0x9d   : > { %739 = vpow2.f32 %v309_v54  ;;  %v327_v17 = vmul.f32 1.442695, %v297_v9  ;;  %v329_v20 = vmul.f32 1.442695, %v298_v13 }
  0x9e   : > { %741 = vpow2.f32 %v311_v56 }
  0x9f   : > { %743 = vpow2.f32 %v313_v58 }
  0xa0   : > { %745 = vpow2.f32 %v315_v60 }
  0xa1   : > { %747 = vpow2.f32 %v317_v63 }
  0xa2   : > { %749 = vpow2.f32 %v319_v2 }
  0xa3   : > { %751 = vpow2.f32 %v321_v6 }
  0xa4   : > { %753 = vpow2.f32 %v323_v10 }
  0xa5   : > { %v730_v61 = vpop.eup %729  ;;  %755 = vpow2.f32 %v325_v14 }
  0xa6   : > { %v732_v0 = vpop.eup %731  ;;  %757 = vpow2.f32 %v327_v17 }
  0xa7   : > { %v331_v3 = vadd.f32 %v732_v0, %v730_v61  ;;  %v734_v4 = vpop.eup %733  ;;  %759 = vpow2.f32 %v329_v20 }
  0xa8   : > { %v736_v8 = vpop.eup %735 }
  0xa9   : > { %v332_v7 = vadd.f32 %v734_v4, %v331_v3  ;;  %v738_v12 = vpop.eup %737 }
  0xaa   : > { %v740_v16 = vpop.eup %739 }
  0xab   : > { %v333_v11 = vadd.f32 %v736_v8, %v332_v7  ;;  %v742_v19 = vpop.eup %741 }
  0xac   : > { %v744_v24 = vpop.eup %743 }
  0xad   : > { %v334_v15 = vadd.f32 %v738_v12, %v333_v11  ;;  %v746_v25 = vpop.eup %745 }
  0xae   : > { %v748_v27 = vpop.eup %747 }
  0xaf   : > { %v335_v18 = vadd.f32 %v740_v16, %v334_v15  ;;  %v750_v23 = vpop.eup %749 }
  0xb0   : > { %v752_v30 = vpop.eup %751 }
  0xb1   : > { %v336_v21 = vadd.f32 %v742_v19, %v335_v18  ;;  %v754_v32 = vpop.eup %753 }
  0xb2   : > { %v756_v34 = vpop.eup %755 }
  0xb3   : > { %v337_v22 = vadd.f32 %v744_v24, %v336_v21  ;;  %v758_v36 = vpop.eup %757 }
  0xb4   : > { %v760_v38 = vpop.eup %759 }
  0xb5   : > { %v338_v26 = vadd.f32 %v746_v25, %v337_v22 }
  0xb7   : > { %v339_v28 = vadd.f32 %v748_v27, %v338_v26 }
  0xb9   : > { %v340_v29 = vadd.f32 %v750_v23, %v339_v28 }
  0xbb   : > { %v341_v31 = vadd.f32 %v752_v30, %v340_v29 }
  0xbd   : > { %v342_v33 = vadd.f32 %v754_v32, %v341_v31 }
  0xbf   : > { %v343_v35 = vadd.f32 %v756_v34, %v342_v33 }
  0xc1   : > { %v344_v37 = vadd.f32 %v758_v36, %v343_v35 }
  0xc3   : > { %v345_v39 = vadd.f32 %v760_v38, %v344_v37 }
  0xc5   : > { %v346_v40 = vrot.slane %v345_v39, 4 }
  0xc7   : > { %v347_v41 = vadd.f32 %v346_v40, %v345_v39 }
  0xc9   : > { %v348_v42 = vrot.slane %v347_v41, 2 }
  0xcb   : > { %v349_v43 = vadd.f32 %v348_v42, %v347_v41 }
  0xcd   : > { %v350_v44 = vrot.slane %v349_v43, 1 }
  0xcf   : > { %v351_v45 = vadd.f32 %v350_v44, %v349_v43 }
  0xd1   : > { %761 = vrcp.f32 %v351_v45 }
  0xde   : > { %v762_v46 = vpop.eup %761 }
  0xdf   : > { %v353_v47 = vmul.f32 %v762_v46, %v730_v61  ;;  %v354_v48 = vmul.f32 %v762_v46, %v732_v0  ;;  %v355_v49 = vmul.f32 %v762_v46, %v734_v4  ;;  %v356_v50 = vmul.f32 %v762_v46, %v736_v8 }
  0xe0   : > { %v357_v51 = vmul.f32 %v762_v46, %v738_v12  ;;  %v358_v52 = vmul.f32 %v762_v46, %v740_v16  ;;  %v359_v53 = vmul.f32 %v762_v46, %v742_v19  ;;  %v360_v54 = vmul.f32 %v762_v46, %v744_v24 }
  0xe1   : > { %v361_v55 = vmul.f32 %v762_v46, %v746_v25  ;;  %v362_v56 = vmul.f32 %v762_v46, %v748_v27  ;;  %v363_v57 = vmul.f32 %v762_v46, %v750_v23  ;;  %v364_v58 = vmul.f32 %v762_v46, %v752_v30 }
  0xe2   : > { %v365_v59 = vmul.f32 %v762_v46, %v754_v32  ;;  %v366_v60 = vmul.f32 %v762_v46, %v756_v34  ;;  %v367_v62 = vmul.f32 %v762_v46, %v758_v36  ;;  %v368_v63 = vmul.f32 %v762_v46, %v760_v38 }
  0xe3   : > { %v601_v1 = vpack.c.bf16 %v354_v48, %v353_v47  ;;  %v606_v61 = vpack.c.bf16 %v356_v50, %v355_v49  ;;  %v611_v0 = vpack.c.bf16 %v358_v52, %v357_v51  ;;  %v616_v2 = vpack.c.bf16 %v360_v54, %v359_v53 }
  0xe4   : > { %v621_v3 = vpack.c.bf16 %v362_v56, %v361_v55  ;;  %v626_v4 = vpack.c.bf16 %v364_v58, %v363_v57  ;;  %v631_v5 = vpack.c.bf16 %v366_v60, %v365_v59  ;;  %v636_v6 = vpack.c.bf16 %v368_v63, %v367_v62 }
  0xe5   : > { %602 = vst [vmem:[%s169_s29] sm:$0xff] %v601_v1   ;;  %638 = vst [vmem:[%s169_s29 + $0x8] sm:$0xff] %v606_v61  }
  0xe6   : > { %639 = vst [vmem:[%s169_s29 + $0x10] sm:$0xff] %v611_v0   ;;  %640 = vst [vmem:[%s169_s29 + $0x18] sm:$0xff] %v616_v2  }
  0xe7   : > { %641 = vst [vmem:[%s169_s29 + $0x20] sm:$0xff] %v621_v3   ;;  %642 = vst [vmem:[%s169_s29 + $0x28] sm:$0xff] %v626_v4  }
  0xe8   : > { %643 = vst [vmem:[%s169_s29 + $0x30] sm:$0xff] %v631_v5   ;;  %644 = vst [vmem:[%s169_s29 + $0x38] sm:$0xff] %v636_v6  }
  0xe9   : > { %813 = shalt.err (!%p810_p2)
}
  0xea   : > { %s814_s16 = scalar_lea.hbm %s1029_s5, 1024  ;;  %s818_s23 = scalar_lea.hbm %s1082_s2, 16384 }
  0xeb   : > { %p815_p3 = scmp.ne.s32.totalorder %s1029_s5, %s814_s16  ;;  %p819_p7 = scmp.lt.s32.totalorder %s1029_s5, %s1082_s2 }
  0xec   : > { %p820_p9 = scmp.lt.s32.totalorder %s818_s23, %s814_s16 }
  0xed   : > { %p816_p5 = pnand %p815_p3, %p948_p4 }
  0xee   : > { %p821_p10 = por %p820_p9, %p819_p7 }
  0xef   : > { %p817_p6 = pneg %p816_p5 }
  0xf1   : > { %p822_p11 = pnand %p821_p10, %p817_p6 }
  0xf3   : > { %825 = shalt.err (!%p822_p11)
}
  0xf4   : > { %s891_s26 = smov 64   ;;  %s892_s27 = smov 4  }
  0xf5   : > { %655 = dma.vmem_to_hbm [thread:$0]  (%p948_p4), %s1031_s30, 1024, %s1029_s5, %s1035_s12, %s891_s26, %s891_s26, %s892_s27  }
  0xf6 PF: > { %p672_p12 = scmp.ge.s32.totalorder %s884_s14, 2  ;;  %s479_s28 = sand.u32 1, %s864_s9  }
  0xf7   : > { %s480_s29 = scalar_lea.sflag [#allocation4], %s479_s28 }
  0xf8   : > { %p665_p13 = pnand %p672_p12, %p955_p8 }
  0xfa   : > { %p666_p0 = pneg %p665_p13 }
  0xfc   : > { %859 = dma.done.wait (%p666_p0), %s480_s29, 1024  }
  0xfd   : > { %861 = vsyncadd (%p666_p0), %s480_s29, 4294966272  ;;  %s17_s14 = sadd.s32 1, %s884_s14   ;;  %s1088_s9 = smov %s868_s10 }
  0xfe   : > { %p14_p1 = scmp.ge.s32.totalorder %s17_s14, 18   ;;  %s1089_s10 = smov %s872_s11 }
  0xff   : > { %s1090_s11 = smov %s961_s22  ;;  %s1091_s12 = smov %s880_s13 }
 0x100   : > { %s1092_s13 = smov %s1094_s17  ;;  %16 = sbr.rel (!%p14_p1) target bundleno = 6 (0x6), region = 71 }
 0x105   :  { %485 = vsyncpa [#allocation3], 1 }
 0x106   :  { %487 = vsyncpa [#allocation3 + $0x1], 1 }
 0x107   :  { %488 = vsyncpa [#allocation4], 1 }
 0x108   :  { %490 = vsyncpa [#allocation4 + $0x1], 1 }
 0x109   :  { %491 = vsyncpa [#allocation5], 1 }
 0x10a   :  { %493 = vsyncpa [#allocation5 + $0x1], 1 }

</bundles_post_ra>
